<compile_context>
chip_gen: v7x
topology: tpu7x:2x2x1
jax: 0.10.0
libtpu: 0.0.40
codegen_flags: <defaults>
</compile_context>

<pallas_src>
import functools

import jax
import jax.numpy as jnp
from jax.experimental import pallas as pl
from jax.experimental.pallas import tpu as pltpu


def _round_up(n, m):
    return ((n + m - 1) // m) * m


# --------------------------------------------------------------------------- #
# Kernel
# --------------------------------------------------------------------------- #
def _critic_kernel(xa_ref,                      # (TB, Din) bf16, rows = [state|ctx|a]
                   w1_ref, b1_ref,              # fused layer-1: (Din, H+AH) bf16, (1, H+AH) f32
                   wa2_ref, ba2_ref,            # adapter layer 2: (AH, H) bf16, (1, H) f32
                   wt2_ref, bt2_ref,            # trunk_2:         (H, H)  bf16, (1, H) f32
                   wq_ref, bq_ref,              # final_val as row vector: (1, H) f32, (1, 1) f32
                   q_ref,                       # (TB, 1) f32
                   *, hidden: int):
    H = hidden

    xa = xa_ref[...]                                                    # bf16

    # Fused layer 1: [trunk_1 | adapter_l1] in a single MXU push.  Both halves
    # end with ReLU, so one maximum covers them.
    h = jnp.dot(xa, w1_ref[...], preferred_element_type=jnp.float32) + b1_ref[...]
    h = jnp.maximum(h, 0.0)                                             # (TB, H+AH) f32
    s1 = h[:, :H]                                                       # trunk_1 output
    a1 = h[:, H:]                                                       # adapter hidden

    # Adapter layer 2 (+ final ReLU: has_act_final=True).
    ctx_val = jnp.dot(a1.astype(jnp.bfloat16), wa2_ref[...],
                      preferred_element_type=jnp.float32) + ba2_ref[...]
    ctx_val = jnp.maximum(ctx_val, 0.0)

    s1 = s1 * ctx_val

    # trunk_2 (+ final ReLU: has_act_final=True).
    s2 = jnp.dot(s1.astype(jnp.bfloat16), wt2_ref[...],
                 preferred_element_type=jnp.float32) + bt2_ref[...]
    s2 = jnp.maximum(s2, 0.0)

    feat = s2 * ctx_val

    # final_val: Linear(H, 1) as an f32 VPU multiply + XLU lane reduce (no MXU push).
    q = jnp.sum(feat * wq_ref[...], axis=-1, keepdims=True) + bq_ref[...]
    q_ref[...] = q.astype(q_ref.dtype)


# --------------------------------------------------------------------------- #
# Host-side parameter preparation (done once): fuse / zero-pad / cast.
# --------------------------------------------------------------------------- #
def prepare_params(raw, *, state_dim, context_dim, act_dim):
    """raw weights are (in_features, out_features); biases are (1, out_features)."""
    H = raw["w_t1"].shape[1]          # trunk_1 / adapter output width (split offset)
    AH = raw["w_a1"].shape[1]
    din = state_dim + context_dim + act_dim       # columns of [x | a]

    # trunk_1 consumes cat([state, a]): scatter its rows into the full
    # [state | ctx | a] row layout, zeros at the ctx rows.
    w_t1_full = jnp.zeros((din, H), jnp.float32)
    w_t1_full = w_t1_full.at[:state_dim].set(raw["w_t1"][:state_dim])
    w_t1_full = w_t1_full.at[state_dim + context_dim:].set(raw["w_t1"][state_dim:])

    # adapter layer 1 consumes cat([ctx, a]): zeros at the state rows.
    w_a1_full = jnp.zeros((din, AH), jnp.float32)
    w_a1_full = w_a1_full.at[state_dim:state_dim + context_dim].set(
        raw["w_a1"][:context_dim])
    w_a1_full = w_a1_full.at[state_dim + context_dim:].set(raw["w_a1"][context_dim:])

    w1 = jnp.concatenate([w_t1_full, w_a1_full], axis=1).astype(jnp.bfloat16)
    b1 = jnp.concatenate([raw["b_t1"], raw["b_a1"]], axis=1)          # f32 (1, H+AH)

    return {
        "w1": w1, "b1": b1,
        "w_a2": raw["w_a2"].astype(jnp.bfloat16), "b_a2": raw["b_a2"],
        "w_t2": raw["w_t2"].astype(jnp.bfloat16), "b_t2": raw["b_t2"],
        "w_q": raw["w_q"].reshape(1, -1).astype(jnp.float32),         # (1, H)
        "b_q": raw["b_q"].reshape(1, 1).astype(jnp.float32),          # (1, 1)
        "hidden": H,
    }


# --------------------------------------------------------------------------- #
# Wrapper
# --------------------------------------------------------------------------- #
def adapter_critic_forward(x, a, prepared, *, batch_tile=1024):
    """x: (B, state_dim + context_dim) f32, a: (B, act_dim) f32 -> q: (B, 1) f32."""
    B = x.shape[0]
    H = prepared["hidden"]

    xa = jnp.concatenate([x, a], axis=1).astype(jnp.bfloat16)         # [state|ctx|a]
    din = xa.shape[1]

    # Batch tile: multiple of 16 (bf16 sublane packing), capped so the
    # double-buffered input + output comfortably fit the v7x VMEM budget.
    tb = min(batch_tile, _round_up(B, 16))
    b_pad = _round_up(B, tb)
    if b_pad != B:
        xa = jnp.pad(xa, ((0, b_pad - B), (0, 0)))

    kernel = functools.partial(_critic_kernel, hidden=H)

    def full(arr):   # weight/bias stays VMEM-resident (same block every grid step)
        return pl.BlockSpec(arr.shape, lambda i: (0,) * arr.ndim)

    q = pl.pallas_call(
        kernel,
        out_shape=jax.ShapeDtypeStruct((b_pad, 1), jnp.float32),
        grid=(b_pad // tb,),
        in_specs=[
            pl.BlockSpec((tb, din), lambda i: (i, 0)),                # batch-tiled input
            full(prepared["w1"]), full(prepared["b1"]),
            full(prepared["w_a2"]), full(prepared["b_a2"]),
            full(prepared["w_t2"]), full(prepared["b_t2"]),
            full(prepared["w_q"]), full(prepared["b_q"]),
        ],
        out_specs=pl.BlockSpec((tb, 1), lambda i: (i, 0)),
        compiler_params=pltpu.CompilerParams(
            dimension_semantics=("parallel",),          # shards batch tiles across v7x's 2 TCs
            vmem_limit_bytes=32 * 1024 * 1024,
        ),
    )(
        xa,
        prepared["w1"], prepared["b1"],
        prepared["w_a2"], prepared["b_a2"],
        prepared["w_t2"], prepared["b_t2"],
        prepared["w_q"], prepared["b_q"],
    )
    return q[:B]


# --------------------------------------------------------------------------- #
# Deterministic synthetic parameters + references
# --------------------------------------------------------------------------- #
def _init_params(key, state_dim, context_dim, act_dim, net_arch, adapter_net_arch):
    assert len(net_arch) == 2
    assert adapter_net_arch[-1] == net_arch[0] == net_arch[1]
    h0, h1 = net_arch
    ah = adapter_net_arch[0]
    keys = jax.random.split(key, 10)

    def lin(kw, kb, fan_in, fan_out):
        bound = 1.0 / jnp.sqrt(jnp.float32(fan_in))
        w = jax.random.uniform(kw, (fan_in, fan_out), jnp.float32, -bound, bound)
        b = jax.random.uniform(kb, (1, fan_out), jnp.float32, -bound, bound)
        return w, b

    w_t1, b_t1 = lin(keys[0], keys[1], state_dim + act_dim, h0)
    w_t2, b_t2 = lin(keys[2], keys[3], h0, h1)
    w_a1, b_a1 = lin(keys[4], keys[5], context_dim + act_dim, ah)
    w_a2, b_a2 = lin(keys[6], keys[7], ah, adapter_net_arch[-1])
    w_q, b_q = lin(keys[8], keys[9], adapter_net_arch[-1], 1)

    return {"w_t1": w_t1, "b_t1": b_t1, "w_t2": w_t2, "b_t2": b_t2,
            "w_a1": w_a1, "b_a1": b_a1, "w_a2": w_a2, "b_a2": b_a2,
            "w_q": w_q, "b_q": b_q}


def _reference_forward_f32(x, a, raw, *, context_dim):
    ctx = x[:, -context_dim:]
    state = x[:, :-context_dim]
    ah = jnp.maximum(jnp.concatenate([ctx, a], 1) @ raw["w_a1"] + raw["b_a1"], 0.0)
    ctx_val = jnp.maximum(ah @ raw["w_a2"] + raw["b_a2"], 0.0)
    s1 = jnp.maximum(jnp.concatenate([state, a], 1) @ raw["w_t1"] + raw["b_t1"], 0.0)
    s1 = s1 * ctx_val
    s2 = jnp.maximum(s1 @ raw["w_t2"] + raw["b_t2"], 0.0)
    feat = s2 * ctx_val
    return feat @ raw["w_q"] + raw["b_q"]


def _reference_forward_bf16(x, a, raw, *, context_dim):
    """Same math with the kernel's bf16 matmul operands / f32 accumulation."""
    bf = jnp.bfloat16
    dot = lambda p, w: jnp.dot(p.astype(bf), w.astype(bf),
                               preferred_element_type=jnp.float32)
    ctx = x[:, -context_dim:]
    state = x[:, :-context_dim]
    ah = jnp.maximum(dot(jnp.concatenate([ctx, a], 1), raw["w_a1"]) + raw["b_a1"], 0.0)
    ctx_val = jnp.maximum(dot(ah, raw["w_a2"]) + raw["b_a2"], 0.0)
    s1 = jnp.maximum(dot(jnp.concatenate([state, a], 1), raw["w_t1"]) + raw["b_t1"], 0.0)
    s1 = s1 * ctx_val
    s2 = jnp.maximum(dot(s1, raw["w_t2"]) + raw["b_t2"], 0.0)
    feat = s2 * ctx_val
    return feat @ raw["w_q"] + raw["b_q"]


if __name__ == "__main__":
    # Small shapes consistent with the module: obs_dim = state_dim + context_dim,
    # net_arch=[32,32], adapter_net_arch=[32,32].
    B = 8
    state_dim = 12
    context_dim = 4
    act_dim = 6
    net_arch = [32, 32]
    adapter_net_arch = [32, 32]

    key = jax.random.PRNGKey(0)
    kx, ka, kp = jax.random.split(key, 3)
    x = jax.random.normal(kx, (B, state_dim + context_dim), jnp.float32)
    a = jax.random.normal(ka, (B, act_dim), jnp.float32)
    raw = _init_params(kp, state_dim, context_dim, act_dim, net_arch, adapter_net_arch)

    prepared = prepare_params(raw, state_dim=state_dim,
                              context_dim=context_dim, act_dim=act_dim)

    q = adapter_critic_forward(x, a, prepared)
    jax.block_until_ready(q)

    ref_bf16 = _reference_forward_bf16(x, a, raw, context_dim=context_dim)
    ref_f32 = _reference_forward_f32(x, a, raw, context_dim=context_dim)

    assert q.shape == (B, 1), f"bad output shape {q.shape}"
    assert jnp.allclose(q, ref_bf16, atol=1e-3, rtol=1e-3), "q mismatch vs bf16 reference"
    assert jnp.allclose(q, ref_f32, atol=5e-2, rtol=5e-2), "q mismatch vs f32 reference"

    print("KERNEL_OK")
</pallas_src>

<mosaic_0001>
module attributes {stable_mosaic.version = 11 : i64} {
  func.func @_critic_kernel(%arg0: i32, %arg1: memref<16x22xbf16, #tpu.memory_space<vmem>>, %arg2: memref<22x64xbf16, #tpu.memory_space<vmem>>, %arg3: memref<1x64xf32, #tpu.memory_space<vmem>>, %arg4: memref<32x32xbf16, #tpu.memory_space<vmem>>, %arg5: memref<1x32xf32, #tpu.memory_space<vmem>>, %arg6: memref<32x32xbf16, #tpu.memory_space<vmem>>, %arg7: memref<1x32xf32, #tpu.memory_space<vmem>>, %arg8: memref<1x32xf32, #tpu.memory_space<vmem>>, %arg9: memref<1x1xf32, #tpu.memory_space<vmem>>, %arg10: memref<16x1xf32, #tpu.memory_space<vmem>>) attributes {dimension_semantics = [#tpu.dimension_semantics<parallel>], iteration_bounds = array<i64: 1>, scalar_prefetch = 0 : i64, scratch_operands = 0 : i64, tpu.core_type = #tpu.core_type<tc>, window_params = [{transform_indices = @transform_0, window_bounds = array<i64: 16, 22>}, {pipeline_mode = #tpu.pipeline_mode<synchronous>, transform_indices = @transform_1, window_bounds = array<i64: 22, 64>}, {pipeline_mode = #tpu.pipeline_mode<synchronous>, transform_indices = @transform_2, window_bounds = array<i64: 1, 64>}, {pipeline_mode = #tpu.pipeline_mode<synchronous>, transform_indices = @transform_3, window_bounds = array<i64: 32, 32>}, {pipeline_mode = #tpu.pipeline_mode<synchronous>, transform_indices = @transform_4, window_bounds = array<i64: 1, 32>}, {pipeline_mode = #tpu.pipeline_mode<synchronous>, transform_indices = @transform_5, window_bounds = array<i64: 32, 32>}, {pipeline_mode = #tpu.pipeline_mode<synchronous>, transform_indices = @transform_6, window_bounds = array<i64: 1, 32>}, {pipeline_mode = #tpu.pipeline_mode<synchronous>, transform_indices = @transform_7, window_bounds = array<i64: 1, 32>}, {pipeline_mode = #tpu.pipeline_mode<synchronous>, transform_indices = @transform_8, window_bounds = array<i64: 1, 1>}, {transform_indices = @transform_9, window_bounds = array<i64: 16, 1>}]} {
    %c0 = arith.constant 0 : index
    %c0_0 = arith.constant 0 : index
    %0 = vector.load %arg1[%c0, %c0_0] : memref<16x22xbf16, #tpu.memory_space<vmem>>, vector<16x22xbf16>
    %c0_1 = arith.constant 0 : index
    %c0_2 = arith.constant 0 : index
    %1 = vector.load %arg2[%c0_1, %c0_2] : memref<22x64xbf16, #tpu.memory_space<vmem>>, vector<22x64xbf16>
    %cst = arith.constant dense<0.000000e+00> : vector<16x64xf32>
    %2 = tpu.matmul %0, %1, %cst {dimension_numbers = #tpu.dot_dimension_numbers<[1], [0], [0], [1], [0, 0, 1, 1], [], []>} : vector<16x22xbf16>, vector<22x64xbf16>, vector<16x64xf32> -> vector<16x64xf32>
    %c0_3 = arith.constant 0 : index
    %c0_4 = arith.constant 0 : index
    %3 = vector.load %arg3[%c0_3, %c0_4] : memref<1x64xf32, #tpu.memory_space<vmem>>, vector<1x64xf32>
    %4 = vector.broadcast %3 : vector<1x64xf32> to vector<16x64xf32>
    %5 = arith.addf %2, %4 : vector<16x64xf32>
    %cst_5 = arith.constant 0.000000e+00 : f32
    %6 = vector.broadcast %cst_5 : f32 to vector<16x64xf32>
    %7 = arith.maximumf %5, %6 : vector<16x64xf32>
    %8 = vector.extract_strided_slice %7 {offsets = [0, 0], sizes = [16, 32], strides = [1, 1]} : vector<16x64xf32> to vector<16x32xf32>
    %9 = vector.extract_strided_slice %7 {offsets = [0, 32], sizes = [16, 32], strides = [1, 1]} : vector<16x64xf32> to vector<16x32xf32>
    %10 = arith.truncf %9 : vector<16x32xf32> to vector<16x32xbf16>
    %c0_6 = arith.constant 0 : index
    %c0_7 = arith.constant 0 : index
    %11 = vector.load %arg4[%c0_6, %c0_7] : memref<32x32xbf16, #tpu.memory_space<vmem>>, vector<32x32xbf16>
    %cst_8 = arith.constant dense<0.000000e+00> : vector<16x32xf32>
    %12 = tpu.matmul %10, %11, %cst_8 {dimension_numbers = #tpu.dot_dimension_numbers<[1], [0], [0], [1], [0, 0, 1, 1], [], []>} : vector<16x32xbf16>, vector<32x32xbf16>, vector<16x32xf32> -> vector<16x32xf32>
    %c0_9 = arith.constant 0 : index
    %c0_10 = arith.constant 0 : index
    %13 = vector.load %arg5[%c0_9, %c0_10] : memref<1x32xf32, #tpu.memory_space<vmem>>, vector<1x32xf32>
    %14 = vector.broadcast %13 : vector<1x32xf32> to vector<16x32xf32>
    %15 = arith.addf %12, %14 : vector<16x32xf32>
    %cst_11 = arith.constant 0.000000e+00 : f32
    %16 = vector.broadcast %cst_11 : f32 to vector<16x32xf32>
    %17 = arith.maximumf %15, %16 : vector<16x32xf32>
    %18 = arith.mulf %8, %17 : vector<16x32xf32>
    %19 = arith.truncf %18 : vector<16x32xf32> to vector<16x32xbf16>
    %c0_12 = arith.constant 0 : index
    %c0_13 = arith.constant 0 : index
    %20 = vector.load %arg6[%c0_12, %c0_13] : memref<32x32xbf16, #tpu.memory_space<vmem>>, vector<32x32xbf16>
    %cst_14 = arith.constant dense<0.000000e+00> : vector<16x32xf32>
    %21 = tpu.matmul %19, %20, %cst_14 {dimension_numbers = #tpu.dot_dimension_numbers<[1], [0], [0], [1], [0, 0, 1, 1], [], []>} : vector<16x32xbf16>, vector<32x32xbf16>, vector<16x32xf32> -> vector<16x32xf32>
    %c0_15 = arith.constant 0 : index
    %c0_16 = arith.constant 0 : index
    %22 = vector.load %arg7[%c0_15, %c0_16] : memref<1x32xf32, #tpu.memory_space<vmem>>, vector<1x32xf32>
    %23 = vector.broadcast %22 : vector<1x32xf32> to vector<16x32xf32>
    %24 = arith.addf %21, %23 : vector<16x32xf32>
    %cst_17 = arith.constant 0.000000e+00 : f32
    %25 = vector.broadcast %cst_17 : f32 to vector<16x32xf32>
    %26 = arith.maximumf %24, %25 : vector<16x32xf32>
    %27 = arith.mulf %26, %17 : vector<16x32xf32>
    %c0_18 = arith.constant 0 : index
    %c0_19 = arith.constant 0 : index
    %28 = vector.load %arg8[%c0_18, %c0_19] : memref<1x32xf32, #tpu.memory_space<vmem>>, vector<1x32xf32>
    %29 = vector.broadcast %28 : vector<1x32xf32> to vector<16x32xf32>
    %30 = arith.mulf %27, %29 : vector<16x32xf32>
    %cst_20 = arith.constant dense<0.000000e+00> : vector<16xf32>
    %31 = vector.multi_reduction <add>, %30, %cst_20 [1] : vector<16x32xf32> to vector<16xf32>
    %32 = vector.shape_cast %31 : vector<16xf32> to vector<16x1xf32>
    %c0_21 = arith.constant 0 : index
    %c0_22 = arith.constant 0 : index
    %33 = vector.load %arg9[%c0_21, %c0_22] : memref<1x1xf32, #tpu.memory_space<vmem>>, vector<1x1xf32>
    %34 = vector.broadcast %33 : vector<1x1xf32> to vector<16x1xf32>
    %35 = arith.addf %32, %34 : vector<16x1xf32>
    %c0_23 = arith.constant 0 : index
    %c0_24 = arith.constant 0 : index
    %36 = vector.load %arg10[%c0_23, %c0_24] : memref<16x1xf32, #tpu.memory_space<vmem>>, vector<16x1xf32>
    tpu.vector_store %arg10[%c0_23, %c0_24], %35 {strides = array<i32>} : memref<16x1xf32, #tpu.memory_space<vmem>>, vector<16x1xf32>,
    return
  }
  func.func @transform_0(%arg0: i32) -> (i32, i32) {
    %c0_i32 = arith.constant 0 : i32
    %c0_i32_0 = arith.constant 0 : i32
    return %arg0, %c0_i32 : i32, i32
  }
  func.func @transform_1(%arg0: i32) -> (i32, i32) {
    %c0_i32 = arith.constant 0 : i32
    %c0_i32_0 = arith.constant 0 : i32
    %c0_i32_1 = arith.constant 0 : i32
    return %c0_i32, %c0_i32_0 : i32, i32
  }
  func.func @transform_2(%arg0: i32) -> (i32, i32) {
    %c0_i32 = arith.constant 0 : i32
    %c0_i32_0 = arith.constant 0 : i32
    %c0_i32_1 = arith.constant 0 : i32
    return %c0_i32, %c0_i32_0 : i32, i32
  }
  func.func @transform_3(%arg0: i32) -> (i32, i32) {
    %c0_i32 = arith.constant 0 : i32
    %c0_i32_0 = arith.constant 0 : i32
    %c0_i32_1 = arith.constant 0 : i32
    return %c0_i32, %c0_i32_0 : i32, i32
  }
  func.func @transform_4(%arg0: i32) -> (i32, i32) {
    %c0_i32 = arith.constant 0 : i32
    %c0_i32_0 = arith.constant 0 : i32
    %c0_i32_1 = arith.constant 0 : i32
    return %c0_i32, %c0_i32_0 : i32, i32
  }
  func.func @transform_5(%arg0: i32) -> (i32, i32) {
    %c0_i32 = arith.constant 0 : i32
    %c0_i32_0 = arith.constant 0 : i32
    %c0_i32_1 = arith.constant 0 : i32
    return %c0_i32, %c0_i32_0 : i32, i32
  }
  func.func @transform_6(%arg0: i32) -> (i32, i32) {
    %c0_i32 = arith.constant 0 : i32
    %c0_i32_0 = arith.constant 0 : i32
    %c0_i32_1 = arith.constant 0 : i32
    return %c0_i32, %c0_i32_0 : i32, i32
  }
  func.func @transform_7(%arg0: i32) -> (i32, i32) {
    %c0_i32 = arith.constant 0 : i32
    %c0_i32_0 = arith.constant 0 : i32
    %c0_i32_1 = arith.constant 0 : i32
    return %c0_i32, %c0_i32_0 : i32, i32
  }
  func.func @transform_8(%arg0: i32) -> (i32, i32) {
    %c0_i32 = arith.constant 0 : i32
    %c0_i32_0 = arith.constant 0 : i32
    %c0_i32_1 = arith.constant 0 : i32
    return %c0_i32, %c0_i32_0 : i32, i32
  }
  func.func @transform_9(%arg0: i32) -> (i32, i32) {
    %c0_i32 = arith.constant 0 : i32
    %c0_i32_0 = arith.constant 0 : i32
    return %arg0, %c0_i32 : i32, i32
  }
}

</mosaic_0001>

<bundles_post_ra>
// kernel: tpu_custom_call.1
= control target key start
LH: loop header
LB: loop body
LE: loop exit
PB: predicated region body
PF: predicated region fallthrough
CT: control target
= control target key end

     0   :  { %s608_s0 = inlined_call_operand.hbm [shape: bf16[16,22], index: 0, kind: input, shape index: {}]   ;;  %s609_s1 = inlined_call_operand.hbm [shape: bf16[22,64], index: 1, kind: input, shape index: {}]   ;;  %s610_s2 = inlined_call_operand.vmem [shape: f32[1,64], index: 2, kind: input, shape index: {}]   ;;  %s611_s3 = inlined_call_operand.hbm [shape: bf16[32,32], index: 3, kind: input, shape index: {}]   ;;  %s612_s4 = inlined_call_operand.vmem [shape: f32[1,32], index: 4, kind: input, shape index: {}]   ;;  %s613_s5 = inlined_call_operand.vmem [shape: bf16[32,32], index: 5, kind: input, shape index: {}]   ;;  %s614_s6 = inlined_call_operand.vmem [shape: f32[1,32], index: 6, kind: input, shape index: {}]   ;;  %s615_s7 = inlined_call_operand.vmem [shape: f32[1,32], index: 7, kind: input, shape index: {}]   ;;  %s616_s8 = inlined_call_operand.<no memory space> [shape: f32[1,1], index: 8, kind: input, shape index: {}]   ;;  %s617_s9 = inlined_call_operand.vmem [shape: f32[16,1], index: 9, kind: output, shape index: {}]  }
   0x1   :  { %v14_v0 = vstv %s616_s8 }
   0x2   :  { %15 = vst [vmem:[#allocation2] sm:$0x1] %v14_v0 }
   0x3   :  { %16 = vsyncpa [#allocation4], 0 }
   0x4   :  { %17 = vsyncpa [#allocation6], 0  ;;  %s467_s11 = smov [#allocation5]   ;;  %s468_s13 = smov [#allocation3]  }
   0x5   :  { %s35_s12 = sshll.u32 %s467_s11, 4  ;;  %s23_s14 = sshll.u32 %s468_s13, 4  ;;  %s36_s12 = int_to_ptr.vmem [resolvable:$true] %s35_s12  ;;  %s528_s14 = int_to_ptr.vmem [resolvable:$true] %s23_s14 }
   0x6   :  { %s397_s17 = scalar_lea.hbm %s609_s1, 192 }
   0x7   :  { %p398_p0 = scmp.ne.s32.totalorder %s609_s1, %s397_s17  ;;  %p401_p1 = scmp.lt.u32.totalorder %s397_s17, %s609_s1 }
   0x9   :  { %p403_p2 = pnand %p401_p1, %p398_p0 }
   0xb   :  { %406 = shalt.err (!%p403_p2)
}
   0xc   :  { %s407_s21 = scalar_lea.vmem %s36_s12, 192  ;;  %p412_p4 = scmp.lt.s32.totalorder %s36_s12, %s36_s12 }
   0xd   :  { %p408_p3 = scmp.ne.s32.totalorder %s36_s12, %s407_s21  ;;  %p413_p5 = scmp.lt.s32.totalorder %s407_s21, %s407_s21 }
   0xf   :  { %p414_p6 = por %p413_p5, %p412_p4 }
  0x11   :  { %p415_p7 = pnand %p414_p6, %p408_p3 }
  0x13   :  { %418 = shalt.err (!%p415_p7)
}
  0x14   :  { %s469_s22 = smov 64   ;;  %s470_s23 = smov 4  }
  0x15   :  { %41 = dma.hbm_to_vmem [thread:$0]  %s609_s1, 192, %s36_s12, [#allocation6], %s469_s22, %s469_s22, %s470_s23  }
  0x16   :  { %s419_s28 = scalar_lea.hbm %s608_s0, 128 }
  0x17   :  { %p420_p8 = scmp.ne.s32.totalorder %s608_s0, %s419_s28  ;;  %p423_p9 = scmp.lt.u32.totalorder %s419_s28, %s608_s0 }
  0x19   :  { %p425_p10 = pnand %p423_p9, %p420_p8 }
  0x1b   :  { %428 = shalt.err (!%p425_p10)
}
  0x1c   :  { %s429_s13 = scalar_lea.vmem %s528_s14, 128  ;;  %p434_p12 = scmp.lt.s32.totalorder %s528_s14, %s528_s14 }
  0x1d   :  { %p430_p11 = scmp.ne.s32.totalorder %s528_s14, %s429_s13  ;;  %p435_p13 = scmp.lt.s32.totalorder %s429_s13, %s429_s13 }
  0x1f   :  { %p436_p0 = por %p435_p13, %p434_p12 }
  0x21   :  { %p437_p1 = pnand %p436_p0, %p430_p11 }
  0x23   :  { %440 = shalt.err (!%p437_p1)
}
  0x24   :  { %29 = dma.hbm_to_vmem [thread:$0]  %s608_s0, 128, %s528_s14, [#allocation4], %s469_s22, %s469_s22, %s470_s23  }
  0x25   :  { %s471_s15 = smov [#allocation7]   ;;  %s441_s19 = scalar_lea.hbm %s611_s3, 256 }
  0x26   :  { %s49_s16 = sshll.u32 %s471_s15, 4  ;;  %p442_p2 = scmp.ne.s32.totalorder %s611_s3, %s441_s19  ;;  %s50_s16 = int_to_ptr.vmem [resolvable:$true] %s49_s16 }
  0x27   :  { %p445_p3 = scmp.lt.u32.totalorder %s441_s19, %s611_s3 }
  0x29   :  { %p447_p4 = pnand %p445_p3, %p442_p2 }
  0x2b   :  { %450 = shalt.err (!%p447_p4)
}
  0x2c   :  { %s451_s25 = scalar_lea.vmem %s50_s16, 256  ;;  %p456_p6 = scmp.lt.s32.totalorder %s50_s16, %s50_s16 }
  0x2d   :  { %p452_p5 = scmp.ne.s32.totalorder %s50_s16, %s451_s25  ;;  %p457_p7 = scmp.lt.s32.totalorder %s451_s25, %s451_s25 }
  0x2f   :  { %p458_p8 = por %p457_p7, %p456_p6 }
  0x31   :  { %p459_p9 = pnand %p458_p8, %p452_p5 }
  0x33   :  { %462 = shalt.err (!%p459_p9)
}
  0x34   :  { %55 = dma.hbm_to_vmem [thread:$0]  %s611_s3, 256, %s50_s16, [#allocation6], %s469_s22, %s469_s22, %s470_s23  }
  0x35   :  { %463 = dma.done.wait [#allocation4], 128  }
  0x36   :  { %464 = vsyncadd [#allocation4], 4294967168 }
  0x37   :  { %465 = dma.done.wait [#allocation6], 448  }
  0x38   :  { %466 = vsyncadd [#allocation6], 4294966848  ;;  %v472_v1 = vmov 0.0   ;;  %vm473_vm0 = vmmov 0   ;;  %v390_v2 = vld [vmem:[#allocation5] sm:$0xff]   ;;  %vm106_vm1 = vcmask 1042432  }
  0x39   :  { %358 = vmatprep.subr.bf16.mxu0 %v472_v1  ;;  %362 = vmatprep.mubr.msk.bf16.mxu0 %vm473_vm0, %v472_v1  ;;  %v391_v3 = vld [vmem:[#allocation5 + $0x8] ss:$0 sps:$4 sm:$0x77]   ;;  %v392_v5 = vld [vmem:[#allocation3] sm:$0xff]   ;;  %vm102_vm2 = vcmask 179200   ;;  %v393_v6 = vld [vmem:[#allocation7] sm:$0xff]  }
  0x3a   :  { %366 = vmatprep.subr.bf16.mxu1 %v472_v1  ;;  %370 = vmatprep.mubr.msk.bf16.mxu1 %vm473_vm0, %v472_v1  ;;  %v108_v4 = vsel %vm106_vm1, %v391_v3, 0  ;;  %v394_v7 = vld [vmem:[#allocation7 + $0x8] sm:$0xff]   ;;  %s474_s23 = smov 96   ;;  %vm180_vm3 = vcmask 261120   ;;  %v396_v20 = vld [vmem:[%s613_s5 + $0x8] sm:$0xff]   ;;  %vm325_vm4 = vcmask 7168  }
  0x3b   :  { %359 = vmatpush3.bf16.msra.mxu0 %v390_v2  ;;  %367 = vmatpush3.bf16.msra.mxu1 %v393_v6  ;;  %v334_v8 = vld [vmem:[%s610_s2] ss:$0 sm:$0xff] }
  0x3c   :  { %360 = vmatprep.subr.bf16.mxu0 %v472_v1  ;;  %368 = vmatprep.subr.bf16.mxu1 %v472_v1  ;;  %v395_v19 = vld [vmem:[%s613_s5] sm:$0xff]  }
  0x3d   :  { %v339_v21 = vld [vmem:[%s612_s4] ss:$0 sm:$0xff] }
  0x3e   :  { %v343_v33 = vld [vmem:[%s614_s6] ss:$0 sm:$0xff] }
  0x3f   :  { %361 = vmatpush3.bf16.msra.mxu0 %v108_v4  ;;  %369 = vmatpush3.bf16.msra.mxu1 %v394_v7  ;;  %v347_v41 = vld [vmem:[%s615_s7] ss:$0 sm:$0xff] }
  0x40   :  { %374 = vmatprep.subr.bf16.mxu0 %v472_v1  ;;  %v348_v49 = vld [vmem:[#allocation2] ss:$0 sm:$0xff] }
  0x42   :  { %363 = vmatmul.mubr.msk.bf16.vlgmr.msra.gmra.mrb[0].mxu0 %vm102_vm2, %v392_v5 }
  0x43   :  { %378 = vmatprep.mubr.msk.bf16.mxu0 %vm473_vm0, %v472_v1  ;;  %375 = vmatpush3.bf16.msra.mxu0 %v395_v19 }
  0x44   :  { %376 = vmatprep.subr.bf16.mxu0 %v472_v1 }
  0x47   :  { %377 = vmatpush3.bf16.msra.mxu0 %v396_v20 }
 0x115   :  { %v144_v9 = vpop.f32.mrb[0].mxu0 }
 0x116   :  { %v145_v10 = vadd.f32 %v334_v8, %v144_v9  ;;  %v364_v11 = vpop.f32.mrb[1].mxu0 }
 0x117   :  { %v147_v12 = vpop.f32.mrb[2].mxu0 }
 0x118   :  { %v148_v13 = vadd.f32 %v334_v8, %v147_v12  ;;  %v365_v14 = vpop.f32.mrb[3].mxu0  ;;  %v151_v15 = vmax.f32 %v145_v10, 0.0 }
 0x11a   :  { %v152_v16 = vmax.f32 %v148_v13, 0.0 }
 0x11c   :  { %v153_v17 = vpack.c.bf16 %v152_v16, %v151_v15 }
 0x11e   :  { %166 = vrot.lane.b32.xlu0 %v153_v17, %s474_s23 }
 0x190   :  { %v167_v18 = vpop.permute.xlu0 %166 }
 0x191   :  { %371 = vmatmul.mubr.msk.bf16.vlgmr.msra.gmra.mrb[0].mxu1 %vm180_vm3, %v167_v18 }
 0x264   :  { %v218_v22 = vpop.f32.mrb[0].mxu1 }
 0x265   :  { %v219_v23 = vadd.f32 %v339_v21, %v218_v22  ;;  %v372_v24 = vpop.f32.mrb[1].mxu1 }
 0x266   :  { %v221_v25 = vpop.f32.mrb[2].mxu1 }
 0x267   :  { %v225_v26 = vmax.f32 %v219_v23, 0.0  ;;  %v222_v27 = vadd.f32 %v339_v21, %v221_v25  ;;  %v373_v28 = vpop.f32.mrb[3].mxu1 }
 0x269   :  { %v226_v29 = vmax.f32 %v222_v27, 0.0  ;;  %v227_v30 = vmul.f32 %v225_v26, %v151_v15 }
 0x26b   :  { %v228_v31 = vmul.f32 %v226_v29, %v152_v16 }
 0x26d   :  { %v229_v32 = vpack.c.bf16 %v228_v31, %v227_v30 }
 0x26f   :  { %379 = vmatmul.mubr.msk.bf16.vlgmr.msra.gmra.mrb[4].mxu0 %vm180_vm3, %v229_v32 }
 0x342   :  { %v290_v34 = vpop.f32.mrb[4].mxu0 }
 0x343   :  { %v291_v35 = vadd.f32 %v343_v33, %v290_v34  ;;  %v380_v36 = vpop.f32.mrb[5].mxu0 }
 0x344   :  { %v293_v37 = vpop.f32.mrb[6].mxu0 }
 0x345   :  { %v297_v38 = vmax.f32 %v291_v35, 0.0  ;;  %v294_v39 = vadd.f32 %v343_v33, %v293_v37  ;;  %v381_v40 = vpop.f32.mrb[7].mxu0 }
 0x347   :  { %v299_v42 = vmul.f32 %v297_v38, %v225_v26  ;;  %v298_v43 = vmax.f32 %v294_v39, 0.0 }
 0x349   :  { %v300_v44 = vmul.f32 %v298_v43, %v226_v29  ;;  %v308_v45 = vmul.f32 %v347_v41, %v299_v42 }
 0x34b   :  { %v310_v46 = vsel %vm180_vm3, %v308_v45, 0.0  ;;  %v309_v47 = vmul.f32 %v347_v41, %v300_v44 }
 0x34c   :  { %311 = vadd.xlane.f32.xlu0 %v310_v46 }
 0x34d   :  { %v313_v48 = vsel %vm180_vm3, %v309_v47, 0.0 }
 0x34e   :  { %314 = vadd.xlane.f32.xlu1 %v313_v48 }
 0x3d9   :  { %v312_v50 = vpop.xlane.xlu0 %311 }
 0x3da   :  { %v323_v51 = vadd.f32 %v348_v49, %v312_v50 }
 0x3db   :  { %v315_v52 = vpop.xlane.xlu1 %314 }
 0x3dc   :  { %326 = vst.msk [vmem:[%s617_s9] sm:$0xff] %vm325_vm4, %v323_v51  ;;  %v324_v53 = vadd.f32 %v348_v49, %v315_v52 }
 0x3de   :  { %327 = vst.msk [vmem:[%s617_s9 + $0x8] sm:$0xff] %vm325_vm4, %v324_v53 }
 0x3df   :  { %332 = vsyncpa [#allocation4], 1 }
 0x3e0   :  { %333 = vsyncpa [#allocation6], 1 }

</bundles_post_ra>
